<compile_context>
chip_gen: v7x
topology: tpu7x:2x2x1
jax: 0.10.0
libtpu: 0.0.40
codegen_flags: <defaults>
</compile_context>

<pallas_src>
import jax
import jax.numpy as jnp
from jax.experimental import pallas as pl
from jax.experimental.pallas import tpu as pltpu


def _pixel_norm_kernel(x_ref, o_ref):
    # Load in native dtype, compute in f32 vregs.
    x = x_ref[...].astype(jnp.float32)
    mean_sq = jnp.mean(x * x, axis=-1, keepdims=True)     # lane reduce (XLU)
    inv = jax.lax.rsqrt(mean_sq + jnp.float32(1e-8))       # EUP slot
    o_ref[...] = (x * inv).astype(o_ref.dtype)


def pixel_norm(x: jax.Array) -> jax.Array:
    """PixelNorm over dim=2 of a (B, N, C) tensor, matching the PyTorch module."""
    assert x.ndim == 3, "PixelNorm (dim=2) expects a (B, N, C) tensor"
    b, n, c = x.shape
    rows = b * n
    x2 = x.reshape(rows, c)  # row-major: pure view, no data movement

    itemsize = jnp.dtype(x.dtype).itemsize
    bytes_per_row = max(c * itemsize, 1)

    # Block sizing: ~4 MiB per input block, sublane-aligned (multiple of 8).
    target_bytes = 4 * 1024 * 1024
    tile_r = (target_bytes // bytes_per_row) // 8 * 8
    tile_r = max(8, tile_r)
    if tile_r >= rows:
        tile_r = rows  # full extent: trivially satisfies the (8,128) rule

    grid = (pl.cdiv(rows, tile_r),)

    # Double-buffered input + output blocks, plus slack for compiler temps.
    vmem_limit = min(int(2 * 2 * tile_r * bytes_per_row * 1.5) + (1 << 20),
                     48 * 1024 * 1024)

    out = pl.pallas_call(
        _pixel_norm_kernel,
        out_shape=jax.ShapeDtypeStruct((rows, c), x.dtype),
        grid=grid,
        in_specs=[pl.BlockSpec((tile_r, c), lambda i: (i, 0))],
        out_specs=pl.BlockSpec((tile_r, c), lambda i: (i, 0)),
        compiler_params=pltpu.CompilerParams(
            dimension_semantics=("parallel",),
            vmem_limit_bytes=vmem_limit,
        ),
        cost_estimate=pl.CostEstimate(
            flops=3 * rows * c,          # square, running sum, final scale
            transcendentals=rows,        # one rsqrt per row
            bytes_accessed=2 * rows * c * itemsize,
        ),
    )(x2)

    return out.reshape(b, n, c)


def _pixel_norm_ref(x: jax.Array) -> jax.Array:
    xf = x.astype(jnp.float32)
    ms = jnp.mean(xf * xf, axis=2, keepdims=True)
    return (xf * jax.lax.rsqrt(ms + 1e-8)).astype(x.dtype)


if __name__ == "__main__":
    key = jax.random.PRNGKey(0)
    # Small transformer-like activation: batch=2, seq=8, hidden=32.
    x = jax.random.normal(key, (2, 8, 32), dtype=jnp.float32)

    y = pixel_norm(x)
    jax.block_until_ready(y)

    ref = _pixel_norm_ref(x)
    assert y.shape == x.shape
    assert jnp.allclose(y, ref, atol=1e-5, rtol=1e-5), "f32 mismatch"

    # bf16 path: native-dtype I/O, f32 compute in-kernel.
    x_bf16 = x.astype(jnp.bfloat16)
    y_bf16 = pixel_norm(x_bf16)
    jax.block_until_ready(y_bf16)
    ref_bf16 = _pixel_norm_ref(x_bf16)
    assert y_bf16.dtype == jnp.bfloat16
    assert jnp.allclose(
        y_bf16.astype(jnp.float32), ref_bf16.astype(jnp.float32),
        atol=2e-2, rtol=2e-2,
    ), "bf16 mismatch"

    print("KERNEL_OK")
</pallas_src>

<mosaic_0001>
module attributes {stable_mosaic.version = 11 : i64} {
  func.func @_pixel_norm_kernel(%arg0: i32, %arg1: memref<16x32xf32, #tpu.memory_space<vmem>>, %arg2: memref<16x32xf32, #tpu.memory_space<vmem>>) attributes {dimension_semantics = [#tpu.dimension_semantics<parallel>], iteration_bounds = array<i64: 1>, scalar_prefetch = 0 : i64, scratch_operands = 0 : i64, tpu.core_type = #tpu.core_type<tc>, window_params = [{transform_indices = @transform_0, window_bounds = array<i64: 16, 32>}, {transform_indices = @transform_1, window_bounds = array<i64: 16, 32>}]} {
    %c0 = arith.constant 0 : index
    %c0_0 = arith.constant 0 : index
    %0 = vector.load %arg1[%c0, %c0_0] : memref<16x32xf32, #tpu.memory_space<vmem>>, vector<16x32xf32>
    %1 = arith.mulf %0, %0 : vector<16x32xf32>
    %cst = arith.constant dense<0.000000e+00> : vector<16xf32>
    %2 = vector.multi_reduction <add>, %1, %cst [1] : vector<16x32xf32> to vector<16xf32>
    %3 = vector.shape_cast %2 : vector<16xf32> to vector<16x1xf32>
    %cst_1 = arith.constant 3.200000e+01 : f32
    %4 = vector.broadcast %cst_1 : f32 to vector<16x1xf32>
    %5 = arith.divf %3, %4 : vector<16x1xf32>
    %cst_2 = arith.constant 9.99999993E-9 : f32
    %6 = vector.broadcast %cst_2 : f32 to vector<16x1xf32>
    %7 = arith.addf %5, %6 : vector<16x1xf32>
    %8 = math.rsqrt %7 : vector<16x1xf32>
    %9 = vector.broadcast %8 : vector<16x1xf32> to vector<16x32xf32>
    %10 = arith.mulf %0, %9 : vector<16x32xf32>
    %c0_3 = arith.constant 0 : index
    %c0_4 = arith.constant 0 : index
    %11 = vector.load %arg2[%c0_3, %c0_4] : memref<16x32xf32, #tpu.memory_space<vmem>>, vector<16x32xf32>
    tpu.vector_store %arg2[%c0_3, %c0_4], %10 {strides = array<i32>} : memref<16x32xf32, #tpu.memory_space<vmem>>, vector<16x32xf32>,
    return
  }
  func.func @transform_0(%arg0: i32) -> (i32, i32) {
    %c0_i32 = arith.constant 0 : i32
    %c0_i32_0 = arith.constant 0 : i32
    return %arg0, %c0_i32 : i32, i32
  }
  func.func @transform_1(%arg0: i32) -> (i32, i32) {
    %c0_i32 = arith.constant 0 : i32
    %c0_i32_0 = arith.constant 0 : i32
    return %arg0, %c0_i32 : i32, i32
  }
}

</mosaic_0001>

<bundles_post_ra>
// kernel: tpu_custom_call.1
= control target key start
LH: loop header
LB: loop body
LE: loop exit
PB: predicated region body
PF: predicated region fallthrough
CT: control target
= control target key end

     0   :  { %6 = vsyncpa [#allocation3], 0  ;;  %s166_s0 = inlined_call_operand.hbm [shape: f32[16,32], index: 0, kind: input, shape index: {}]   ;;  %s167_s1 = inlined_call_operand.hbm [shape: f32[16,32], index: 1, kind: output, shape index: {}]  }
   0x1   :  { %7 = vsyncpa [#allocation4], 0  ;;  %s118_s6 = smov [#allocation2]   ;;  %s70_s10 = scalar_lea.hbm %s166_s0, 256 }
   0x2   :  { %s13_s7 = sshll.u32 %s118_s6, 4  ;;  %p71_p0 = scmp.ne.s32.totalorder %s166_s0, %s70_s10  ;;  %s14_s7 = int_to_ptr.vmem [resolvable:$true] %s13_s7 }
   0x3   :  { %p74_p1 = scmp.lt.u32.totalorder %s70_s10, %s166_s0 }
   0x5   :  { %p76_p2 = pnand %p74_p1, %p71_p0 }
   0x7   :  { %79 = shalt.err (!%p76_p2)
}
   0x8   :  { %s80_s15 = scalar_lea.vmem %s14_s7, 256  ;;  %p85_p4 = scmp.lt.s32.totalorder %s14_s7, %s14_s7 }
   0x9   :  { %p81_p3 = scmp.ne.s32.totalorder %s14_s7, %s80_s15  ;;  %p86_p5 = scmp.lt.s32.totalorder %s80_s15, %s80_s15 }
   0xb   :  { %p87_p6 = por %p86_p5, %p85_p4 }
   0xd   :  { %p88_p7 = pnand %p87_p6, %p81_p3 }
   0xf   :  { %91 = shalt.err (!%p88_p7)
}
  0x10   :  { %s119_s16 = smov 128   ;;  %s120_s17 = smov 8  }
  0x11   :  { %19 = dma.hbm_to_vmem [thread:$0]  %s166_s0, 256, %s14_s7, [#allocation3], %s119_s16, %s119_s16, %s120_s17  }
  0x12   :  { %114 = dma.done.wait [#allocation3], 256  }
  0x13   :  { %115 = vsyncadd [#allocation3], 4294967040  ;;  %v23_v0 = vld [vmem:[#allocation2] sm:$0xff]  ;;  %vm27_vm0 = vcmask 261120   ;;  %v24_v1 = vld [vmem:[#allocation2 + $0x8] sm:$0xff]  ;;  %s121_s0 = smov [#allocation5]  }
  0x14   :  { %v25_v2 = vmul.f32 %v23_v0, %v23_v0  ;;  %v26_v3 = vmul.f32 %v24_v1, %v24_v1  ;;  %s50_s20 = sshll.u32 %s121_s0, 4  ;;  %s51_s20 = int_to_ptr.vmem [resolvable:$true] %s50_s20 }
  0x15   :  { %s92_s21 = scalar_lea.vmem %s51_s20, 256  ;;  %p97_p9 = scmp.lt.s32.totalorder %s51_s20, %s51_s20 }
  0x16   :  { %v28_v4 = vsel %vm27_vm0, %v25_v2, 0.0  ;;  %v31_v5 = vsel %vm27_vm0, %v26_v3, 0.0  ;;  %p93_p8 = scmp.ne.s32.totalorder %s51_s20, %s92_s21  ;;  %p98_p10 = scmp.lt.s32.totalorder %s92_s21, %s92_s21 }
  0x17   :  { %29 = vadd.xlane.f32.xlu0 %v28_v4 }
  0x18   :  { %p99_p11 = por %p98_p10, %p97_p9 }
  0x1a   :  { %p100_p12 = pnand %p99_p11, %p93_p8 }
  0x1b   :  { %32 = vadd.xlane.f32.xlu0 %v31_v5 }
  0xa4   :  { %v30_v6 = vpop.xlane.xlu0 %29 }
  0xa5   :  { %v35_v7 = vmul.f32 0.03125, %v30_v6 }
  0xa7   :  { %v37_v8 = vadd.f32 1e-08, %v35_v7 }
  0xa8   :  { %v33_v9 = vpop.xlane.xlu0 %32 }
  0xa9   :  { %66 = vrsqrt.f32 %v37_v8  ;;  %v36_v10 = vmul.f32 0.03125, %v33_v9 }
  0xab   :  { %v38_v11 = vadd.f32 1e-08, %v36_v10 }
  0xad   :  { %68 = vrsqrt.f32 %v38_v11 }
  0xb3   :  { %v67_v12 = vpop.eup %66 }
  0xb4   :  { %v41_v13 = vmul.f32 %v67_v12, %v23_v0 }
  0xb6   :  { %43 = vst.msk [vmem:[#allocation5] sm:$0xff] %vm27_vm0, %v41_v13 }
  0xb7   :  { %v69_v14 = vpop.eup %68 }
  0xb8   :  { %v42_v15 = vmul.f32 %v69_v14, %v24_v1 }
  0xba   :  { %44 = vst.msk [vmem:[#allocation5 + $0x8] sm:$0xff] %vm27_vm0, %v42_v15 }
  0xbb   :  { %103 = shalt.err (!%p100_p12)
}
  0xbc   :  { %s104_s24 = scalar_lea.hbm %s167_s1, 256 }
  0xbd   :  { %p105_p13 = scmp.ne.s32.totalorder %s167_s1, %s104_s24  ;;  %p108_p0 = scmp.lt.u32.totalorder %s104_s24, %s167_s1 }
  0xbf   :  { %p110_p1 = pnand %p108_p0, %p105_p13 }
  0xc1   :  { %113 = shalt.err (!%p110_p1)
}
  0xc2   :  { %56 = dma.vmem_to_hbm [thread:$0]  %s51_s20, 256, %s167_s1, [#allocation4], %s119_s16, %s119_s16, %s120_s17  }
  0xc3   :  { %116 = dma.done.wait [#allocation4], 256  }
  0xc4   :  { %117 = vsyncadd [#allocation4], 4294967040 }
  0xc5   :  { %60 = vsyncpa [#allocation3], 1 }
  0xc6   :  { %61 = vsyncpa [#allocation4], 1 }

</bundles_post_ra>
